<compile_context>
chip_gen: v7x
topology: tpu7x:2x2x1
jax: 0.10.0
libtpu: 0.0.40
codegen_flags: <defaults>
</compile_context>

<pallas_src>
import functools
import math

import jax
import jax.numpy as jnp
from jax import lax
from jax.experimental import pallas as pl
from jax.experimental.pallas import tpu as pltpu

_LN_EPS = 1e-5  # PyTorch nn.LayerNorm default


def _layer_norm_f32(x, gamma, beta):
    """LayerNorm over the last axis, computed in f32 (matches the LayerNorm
    subclass that computes in fp32 and casts back)."""
    x32 = x.astype(jnp.float32)
    mu = jnp.mean(x32, axis=-1, keepdims=True)
    var = jnp.mean((x32 - mu) ** 2, axis=-1, keepdims=True)
    xn = (x32 - mu) * lax.rsqrt(var + _LN_EPS)
    return xn * gamma.astype(jnp.float32) + beta.astype(jnp.float32)


def _query_prep_kernel(q_ref, lnq_g_ref, lnq_b_ref, wq_t_ref, bq_ref, o_ref, *,
                       scale):
    # q_ref: (Q, D)   lnq_*: (1, D)   wq_t: (D, D)   bq: (1, D)
    qn = _layer_norm_f32(q_ref[...], lnq_g_ref[...], lnq_b_ref[...])
    qp = jnp.dot(qn, wq_t_ref[...].astype(jnp.float32),
                 preferred_element_type=jnp.float32) + bq_ref[...].astype(jnp.float32)
    o_ref[...] = (qp * scale).astype(o_ref.dtype)


def _pooler_kernel(qp_ref, x_ref, lnk_g_ref, lnk_b_ref,
                   wk_t_ref, bk_ref, wv_t_ref, bv_ref,
                   wo_t_ref, bo_ref, o_ref, *, n_head):
    # qp_ref: (Q, D) pre-scaled projected queries (resident across grid)
    # x_ref:  (1, S, Cd) this batch element's keys/values input
    # weights pre-transposed so every matmul is a plain row-major x @ W.

    # LayerNorm(key/value input) over the context dim.
    xk = _layer_norm_f32(x_ref[0], lnk_g_ref[...], lnk_b_ref[...])        # (S, Cd)

    # K / V projections on the MXU.
    k = jnp.dot(xk, wk_t_ref[...].astype(jnp.float32),
                preferred_element_type=jnp.float32) + bk_ref[...].astype(jnp.float32)
    v = jnp.dot(xk, wv_t_ref[...].astype(jnp.float32),
                preferred_element_type=jnp.float32) + bv_ref[...].astype(jnp.float32)

    qp = qp_ref[...].astype(jnp.float32)                                  # (Q, D)
    D = qp.shape[-1]
    dh = D // n_head

    # Accumulate the output projection head-by-head:
    #   out = sum_h softmax(q_h k_h^T) v_h @ Wo^T[:, h-block]
    # Each partial matmul produces a full lane-width (Q, D) slab, so the
    # accumulator and the final store are lane-dense.
    out = jnp.broadcast_to(bo_ref[...].astype(jnp.float32), qp.shape)     # (Q, D)
    for h in range(n_head):                                               # static unroll
        sl = slice(h * dh, (h + 1) * dh)
        qh, kh, vh = qp[:, sl], k[:, sl], v[:, sl]
        s = jnp.einsum('qd,sd->qs', qh, kh,
                       preferred_element_type=jnp.float32)                # (Q, S)
        s = s - jnp.max(s, axis=-1, keepdims=True)
        p = jnp.exp(s)
        p = p / jnp.sum(p, axis=-1, keepdims=True)
        oh = jnp.dot(p, vh, preferred_element_type=jnp.float32)           # (Q, dh)
        out = out + jnp.dot(oh, wo_t_ref[sl, :].astype(jnp.float32),
                            preferred_element_type=jnp.float32)           # (Q, D)

    o_ref[0] = out.astype(o_ref.dtype)


def attentional_pooler(x, params, *, n_head):
    """x: (B, S, context_dim) -> (B, n_queries, d_model)."""
    B, S, Cd = x.shape
    query = params['query']
    Q, D = query.shape
    assert D % n_head == 0
    dh = D // n_head

    # Pre-transpose weights once (XLA-side, negligible) so kernels do x @ W.
    wq_t = params['wq'].T                      # (D, D)
    wk_t = params['wk'].T                      # (Cd, D)
    wv_t = params['wv'].T                      # (Cd, D)
    wo_t = params['wo'].T                      # (D, D)
    bq = params['bq'].reshape(1, D)
    bk = params['bk'].reshape(1, D)
    bv = params['bv'].reshape(1, D)
    bo = params['bo'].reshape(1, D)
    lnq_g = params['lnq_g'].reshape(1, D)
    lnq_b = params['lnq_b'].reshape(1, D)
    lnk_g = params['lnk_g'].reshape(1, Cd)
    lnk_b = params['lnk_b'].reshape(1, Cd)

    # --- Kernel 1: batch-independent query prep (run once, not per batch). ---
    qp = pl.pallas_call(
        functools.partial(_query_prep_kernel, scale=1.0 / math.sqrt(dh)),
        out_shape=jax.ShapeDtypeStruct((Q, D), jnp.float32),
        grid_spec=pltpu.PrefetchScalarGridSpec(
            num_scalar_prefetch=0,
            grid=(1,),
            in_specs=[
                pl.BlockSpec((Q, D), lambda i: (0, 0)),
                pl.BlockSpec((1, D), lambda i: (0, 0)),
                pl.BlockSpec((1, D), lambda i: (0, 0)),
                pl.BlockSpec((D, D), lambda i: (0, 0)),
                pl.BlockSpec((1, D), lambda i: (0, 0)),
            ],
            out_specs=pl.BlockSpec((Q, D), lambda i: (0, 0)),
        ),
    )(query, lnq_g, lnq_b, wq_t, bq)

    # --- Kernel 2: fused LN_k + K/V proj + attention + out proj, per batch. ---
    out = pl.pallas_call(
        functools.partial(_pooler_kernel, n_head=n_head),
        out_shape=jax.ShapeDtypeStruct((B, Q, D), x.dtype),
        grid_spec=pltpu.PrefetchScalarGridSpec(
            num_scalar_prefetch=0,
            grid=(B,),
            in_specs=[
                pl.BlockSpec((Q, D), lambda b: (0, 0)),        # qp (resident)
                pl.BlockSpec((1, S, Cd), lambda b: (b, 0, 0)),  # x[b]
                pl.BlockSpec((1, Cd), lambda b: (0, 0)),        # ln_k gamma
                pl.BlockSpec((1, Cd), lambda b: (0, 0)),        # ln_k beta
                pl.BlockSpec((Cd, D), lambda b: (0, 0)),        # Wk^T
                pl.BlockSpec((1, D), lambda b: (0, 0)),         # bk
                pl.BlockSpec((Cd, D), lambda b: (0, 0)),        # Wv^T
                pl.BlockSpec((1, D), lambda b: (0, 0)),         # bv
                pl.BlockSpec((D, D), lambda b: (0, 0)),         # Wo^T
                pl.BlockSpec((1, D), lambda b: (0, 0)),         # bo
            ],
            out_specs=pl.BlockSpec((1, Q, D), lambda b: (b, 0, 0)),
        ),
        compiler_params=pltpu.CompilerParams(
            # batch axis is independent -> shards across the 2 TCs on v7x
            dimension_semantics=("parallel",),
        ),
    )(qp, x, lnk_g, lnk_b, wk_t, bk, wv_t, bv, wo_t, bo)
    return out


def _reference(x, params, n_head):
    """Pure-JAX reference mirroring torch.nn.MultiheadAttention math."""
    def ln(t, g, b):
        mu = t.mean(-1, keepdims=True)
        var = ((t - mu) ** 2).mean(-1, keepdims=True)
        return (t - mu) / jnp.sqrt(var + _LN_EPS) * g + b

    Q, D = params['query'].shape
    dh = D // n_head
    B, S, _ = x.shape

    q = ln(params['query'], params['lnq_g'], params['lnq_b'])
    xk = ln(x, params['lnk_g'], params['lnk_b'])
    qp = (q @ params['wq'].T + params['bq']) / jnp.sqrt(dh)
    k = xk @ params['wk'].T + params['bk']
    v = xk @ params['wv'].T + params['bv']

    qh = qp.reshape(Q, n_head, dh)
    kh = k.reshape(B, S, n_head, dh)
    vh = v.reshape(B, S, n_head, dh)
    s = jnp.einsum('qhd,bshd->bhqs', qh, kh)
    p = jax.nn.softmax(s, axis=-1)
    o = jnp.einsum('bhqs,bshd->bqhd', p, vh).reshape(B, Q, D)
    return o @ params['wo'].T + params['bo']


if __name__ == "__main__":
    B, S = 2, 16
    context_dim = 64
    d_model = 32
    n_head = 4
    n_queries = 8
    f32 = jnp.float32

    keys = jax.random.split(jax.random.PRNGKey(0), 14)
    params = dict(
        query=jax.random.normal(keys[0], (n_queries, d_model), f32),
        lnq_g=1.0 + 0.1 * jax.random.normal(keys[1], (d_model,), f32),
        lnq_b=0.1 * jax.random.normal(keys[2], (d_model,), f32),
        lnk_g=1.0 + 0.1 * jax.random.normal(keys[3], (context_dim,), f32),
        lnk_b=0.1 * jax.random.normal(keys[4], (context_dim,), f32),
        wq=jax.random.normal(keys[5], (d_model, d_model), f32) / math.sqrt(d_model),
        wk=jax.random.normal(keys[6], (d_model, context_dim), f32) / math.sqrt(context_dim),
        wv=jax.random.normal(keys[7], (d_model, context_dim), f32) / math.sqrt(context_dim),
        bq=0.1 * jax.random.normal(keys[8], (d_model,), f32),
        bk=0.1 * jax.random.normal(keys[9], (d_model,), f32),
        bv=0.1 * jax.random.normal(keys[10], (d_model,), f32),
        wo=jax.random.normal(keys[11], (d_model, d_model), f32) / math.sqrt(d_model),
        bo=0.1 * jax.random.normal(keys[12], (d_model,), f32),
    )
    x = jax.random.normal(keys[13], (B, S, context_dim), f32)

    out = attentional_pooler(x, params, n_head=n_head)
    out = jax.block_until_ready(out)

    ref = _reference(x, params, n_head)
    assert out.shape == (B, n_queries, d_model), out.shape
    assert jnp.allclose(out, ref, atol=1e-4, rtol=1e-4), float(
        jnp.max(jnp.abs(out - ref)))

    print("KERNEL_OK")
</pallas_src>

<mosaic_0001>
module attributes {stable_mosaic.version = 11 : i64} {
  func.func @_query_prep_kernel(%arg0: i32, %arg1: memref<8x32xf32, #tpu.memory_space<vmem>>, %arg2: memref<1x32xf32, #tpu.memory_space<vmem>>, %arg3: memref<1x32xf32, #tpu.memory_space<vmem>>, %arg4: memref<32x32xf32, #tpu.memory_space<vmem>>, %arg5: memref<1x32xf32, #tpu.memory_space<vmem>>, %arg6: memref<8x32xf32, #tpu.memory_space<vmem>>) attributes {dimension_semantics = [#tpu.dimension_semantics<arbitrary>], iteration_bounds = array<i64: 1>, scalar_prefetch = 0 : i64, scratch_operands = 0 : i64, tpu.core_type = #tpu.core_type<tc>, window_params = [{pipeline_mode = #tpu.pipeline_mode<synchronous>, transform_indices = @transform_0, window_bounds = array<i64: 8, 32>}, {pipeline_mode = #tpu.pipeline_mode<synchronous>, transform_indices = @transform_1, window_bounds = array<i64: 1, 32>}, {pipeline_mode = #tpu.pipeline_mode<synchronous>, transform_indices = @transform_2, window_bounds = array<i64: 1, 32>}, {pipeline_mode = #tpu.pipeline_mode<synchronous>, transform_indices = @transform_3, window_bounds = array<i64: 32, 32>}, {pipeline_mode = #tpu.pipeline_mode<synchronous>, transform_indices = @transform_4, window_bounds = array<i64: 1, 32>}, {pipeline_mode = #tpu.pipeline_mode<synchronous>, transform_indices = @transform_5, window_bounds = array<i64: 8, 32>}]} {
    %c0 = arith.constant 0 : index
    %c0_0 = arith.constant 0 : index
    %0 = vector.load %arg1[%c0, %c0_0] : memref<8x32xf32, #tpu.memory_space<vmem>>, vector<8x32xf32>
    %c0_1 = arith.constant 0 : index
    %c0_2 = arith.constant 0 : index
    %1 = vector.load %arg2[%c0_1, %c0_2] : memref<1x32xf32, #tpu.memory_space<vmem>>, vector<1x32xf32>
    %c0_3 = arith.constant 0 : index
    %c0_4 = arith.constant 0 : index
    %2 = vector.load %arg3[%c0_3, %c0_4] : memref<1x32xf32, #tpu.memory_space<vmem>>, vector<1x32xf32>
    %cst = arith.constant dense<0.000000e+00> : vector<8xf32>
    %3 = vector.multi_reduction <add>, %0, %cst [1] : vector<8x32xf32> to vector<8xf32>
    %4 = vector.shape_cast %3 : vector<8xf32> to vector<8x1xf32>
    %cst_5 = arith.constant 3.200000e+01 : f32
    %5 = vector.broadcast %cst_5 : f32 to vector<8x1xf32>
    %6 = arith.divf %4, %5 : vector<8x1xf32>
    %7 = vector.broadcast %6 : vector<8x1xf32> to vector<8x32xf32>
    %8 = arith.subf %0, %7 : vector<8x32xf32>
    %9 = arith.mulf %8, %8 : vector<8x32xf32>
    %cst_6 = arith.constant dense<0.000000e+00> : vector<8xf32>
    %10 = vector.multi_reduction <add>, %9, %cst_6 [1] : vector<8x32xf32> to vector<8xf32>
    %11 = vector.shape_cast %10 : vector<8xf32> to vector<8x1xf32>
    %cst_7 = arith.constant 3.200000e+01 : f32
    %12 = vector.broadcast %cst_7 : f32 to vector<8x1xf32>
    %13 = arith.divf %11, %12 : vector<8x1xf32>
    %14 = vector.broadcast %6 : vector<8x1xf32> to vector<8x32xf32>
    %15 = arith.subf %0, %14 : vector<8x32xf32>
    %cst_8 = arith.constant 9.99999974E-6 : f32
    %16 = vector.broadcast %cst_8 : f32 to vector<8x1xf32>
    %17 = arith.addf %13, %16 : vector<8x1xf32>
    %18 = math.rsqrt %17 : vector<8x1xf32>
    %19 = vector.broadcast %18 : vector<8x1xf32> to vector<8x32xf32>
    %20 = arith.mulf %15, %19 : vector<8x32xf32>
    %21 = vector.broadcast %1 : vector<1x32xf32> to vector<8x32xf32>
    %22 = arith.mulf %20, %21 : vector<8x32xf32>
    %23 = vector.broadcast %2 : vector<1x32xf32> to vector<8x32xf32>
    %24 = arith.addf %22, %23 : vector<8x32xf32>
    %c0_9 = arith.constant 0 : index
    %c0_10 = arith.constant 0 : index
    %25 = vector.load %arg4[%c0_9, %c0_10] : memref<32x32xf32, #tpu.memory_space<vmem>>, vector<32x32xf32>
    %cst_11 = arith.constant dense<0.000000e+00> : vector<8x32xf32>
    %26 = tpu.matmul %24, %25, %cst_11 {dimension_numbers = #tpu.dot_dimension_numbers<[1], [0], [0], [1], [0, 0, 1, 1], [], []>} : vector<8x32xf32>, vector<32x32xf32>, vector<8x32xf32> -> vector<8x32xf32>
    %c0_12 = arith.constant 0 : index
    %c0_13 = arith.constant 0 : index
    %27 = vector.load %arg5[%c0_12, %c0_13] : memref<1x32xf32, #tpu.memory_space<vmem>>, vector<1x32xf32>
    %28 = vector.broadcast %27 : vector<1x32xf32> to vector<8x32xf32>
    %29 = arith.addf %26, %28 : vector<8x32xf32>
    %cst_14 = arith.constant 0.353553385 : f32
    %30 = vector.broadcast %cst_14 : f32 to vector<8x32xf32>
    %31 = arith.mulf %29, %30 : vector<8x32xf32>
    %c0_15 = arith.constant 0 : index
    %c0_16 = arith.constant 0 : index
    %32 = vector.load %arg6[%c0_15, %c0_16] : memref<8x32xf32, #tpu.memory_space<vmem>>, vector<8x32xf32>
    tpu.vector_store %arg6[%c0_15, %c0_16], %31 {strides = array<i32>} : memref<8x32xf32, #tpu.memory_space<vmem>>, vector<8x32xf32>,
    return
  }
  func.func @transform_0(%arg0: i32) -> (i32, i32) {
    %c0_i32 = arith.constant 0 : i32
    %c0_i32_0 = arith.constant 0 : i32
    %c0_i32_1 = arith.constant 0 : i32
    return %c0_i32, %c0_i32_0 : i32, i32
  }
  func.func @transform_1(%arg0: i32) -> (i32, i32) {
    %c0_i32 = arith.constant 0 : i32
    %c0_i32_0 = arith.constant 0 : i32
    %c0_i32_1 = arith.constant 0 : i32
    return %c0_i32, %c0_i32_0 : i32, i32
  }
  func.func @transform_2(%arg0: i32) -> (i32, i32) {
    %c0_i32 = arith.constant 0 : i32
    %c0_i32_0 = arith.constant 0 : i32
    %c0_i32_1 = arith.constant 0 : i32
    return %c0_i32, %c0_i32_0 : i32, i32
  }
  func.func @transform_3(%arg0: i32) -> (i32, i32) {
    %c0_i32 = arith.constant 0 : i32
    %c0_i32_0 = arith.constant 0 : i32
    %c0_i32_1 = arith.constant 0 : i32
    return %c0_i32, %c0_i32_0 : i32, i32
  }
  func.func @transform_4(%arg0: i32) -> (i32, i32) {
    %c0_i32 = arith.constant 0 : i32
    %c0_i32_0 = arith.constant 0 : i32
    %c0_i32_1 = arith.constant 0 : i32
    return %c0_i32, %c0_i32_0 : i32, i32
  }
  func.func @transform_5(%arg0: i32) -> (i32, i32) {
    %c0_i32 = arith.constant 0 : i32
    %c0_i32_0 = arith.constant 0 : i32
    %c0_i32_1 = arith.constant 0 : i32
    return %c0_i32, %c0_i32_0 : i32, i32
  }
}

</mosaic_0001>

<bundles_post_ra>
// kernel: tpu_custom_call.1
= control target key start
LH: loop header
LB: loop body
LE: loop exit
PB: predicated region body
PF: predicated region fallthrough
CT: control target
= control target key end

     0   :  { %10 = vsyncpa [#allocation3], 0  ;;  %s383_s0 = inlined_call_operand.hbm [shape: f32[8,32], index: 0, kind: input, shape index: {}]   ;;  %s384_s1 = inlined_call_operand.vmem [shape: f32[1,32], index: 1, kind: input, shape index: {}]   ;;  %s385_s2 = inlined_call_operand.vmem [shape: f32[1,32], index: 2, kind: input, shape index: {}]   ;;  %s386_s3 = inlined_call_operand.hbm [shape: f32[32,32], index: 3, kind: input, shape index: {}]   ;;  %s387_s4 = inlined_call_operand.vmem [shape: f32[1,32], index: 4, kind: input, shape index: {}]   ;;  %s388_s5 = inlined_call_operand.hbm [shape: f32[8,32], index: 5, kind: output, shape index: {}]  }
   0x1   :  { %11 = vsyncpa [#allocation6], 0 }
   0x2   :  { %12 = vsyncpa [#allocation4], 0  ;;  %s289_s18 = smov [#allocation2]   ;;  %s290_s20 = smov [#allocation5]  }
   0x3   :  { %s19_s19 = sshll.u32 %s289_s18, 4  ;;  %s32_s21 = sshll.u32 %s290_s20, 4  ;;  %s20_s19 = int_to_ptr.vmem [resolvable:$true] %s19_s19  ;;  %s327_s21 = int_to_ptr.vmem [resolvable:$true] %s32_s21 }
   0x4   :  { %s217_s24 = scalar_lea.hbm %s383_s0, 128 }
   0x5   :  { %p218_p0 = scmp.ne.s32.totalorder %s383_s0, %s217_s24  ;;  %p221_p1 = scmp.lt.u32.totalorder %s217_s24, %s383_s0 }
   0x7   :  { %p223_p2 = pnand %p221_p1, %p218_p0 }
   0x9   :  { %226 = shalt.err (!%p223_p2)
}
   0xa   :  { %s227_s29 = scalar_lea.vmem %s20_s19, 128  ;;  %p232_p4 = scmp.lt.s32.totalorder %s20_s19, %s20_s19 }
   0xb   :  { %p228_p3 = scmp.ne.s32.totalorder %s20_s19, %s227_s29  ;;  %p233_p5 = scmp.lt.s32.totalorder %s227_s29, %s227_s29 }
   0xd   :  { %p234_p6 = por %p233_p5, %p232_p4 }
   0xf   :  { %p235_p7 = pnand %p234_p6, %p228_p3 }
  0x11   :  { %238 = shalt.err (!%p235_p7)
}
  0x12   :  { %22 = dma.hbm_to_vmem [thread:$0]  %s383_s0, 128, %s20_s19, [#allocation3]  }
  0x13   :  { %s239_s9 = scalar_lea.hbm %s386_s3, 512 }
  0x14   :  { %p240_p8 = scmp.ne.s32.totalorder %s386_s3, %s239_s9  ;;  %p243_p9 = scmp.lt.u32.totalorder %s239_s9, %s386_s3 }
  0x16   :  { %p245_p10 = pnand %p243_p9, %p240_p8 }
  0x18   :  { %248 = shalt.err (!%p245_p10)
}
  0x19   :  { %s249_s14 = scalar_lea.vmem %s327_s21, 512  ;;  %p254_p12 = scmp.lt.s32.totalorder %s327_s21, %s327_s21 }
  0x1a   :  { %p250_p11 = scmp.ne.s32.totalorder %s327_s21, %s249_s14  ;;  %p255_p13 = scmp.lt.s32.totalorder %s249_s14, %s249_s14 }
  0x1c   :  { %p256_p0 = por %p255_p13, %p254_p12 }
  0x1e   :  { %p257_p1 = pnand %p256_p0, %p250_p11 }
  0x20   :  { %260 = shalt.err (!%p257_p1)
}
  0x21   :  { %s291_s0 = smov 128   ;;  %s292_s15 = smov 8  }
  0x22   :  { %38 = dma.hbm_to_vmem [thread:$0]  %s386_s3, 512, %s327_s21, [#allocation6], %s291_s0, %s291_s0, %s292_s15  }
  0x23   :  { %283 = dma.done.wait [#allocation3], 128  }
  0x24   :  { %284 = vsyncadd [#allocation3], 4294967168 }
  0x25   :  { %285 = dma.done.wait [#allocation6], 512  }
  0x26   :  { %286 = vsyncadd [#allocation6], 4294966784  ;;  %vm50_vm0 = vcmask 261120   ;;  %v47_v0 = vld [vmem:[#allocation2] sm:$0xff]  ;;  %v79_v7 = vld [vmem:[#allocation5] sm:$0xff]  ;;  %v293_v10 = vmov 0.0|0.0  }
  0x27   :  { %v51_v1 = vsel %vm50_vm0, %v47_v0, 0.0  ;;  %v80_v8 = vld [vmem:[#allocation5 + $0x8] sm:$0xff]  ;;  %v81_v9 = vld [vmem:[#allocation5 + $0x10] sm:$0xff]  ;;  %201 = vmatprep.subr.bf16.mxu0 %v293_v10  ;;  %v82_v12 = vld [vmem:[#allocation5 + $0x18] sm:$0xff]  ;;  %vm294_vm1 = vmmov 0   ;;  %v295_v13 = vmov 0.0  }
  0x28   :  { %52 = vadd.xlane.f32.xlu0 %v51_v1  ;;  %v202_v11 = vpack.c.bf16 %v80_v8, %v79_v7  ;;  %198 = vmatprep.mubr.msk.f32.mxu0 %vm294_vm1, %v295_v13  ;;  %v205_v14 = vpack.c.bf16 %v82_v12, %v81_v9  ;;  %v181_v19 = vld [vmem:[%s384_s1] ss:$0 sm:$0xff]  ;;  %s296_s23 = smov [#allocation7]  }
  0x29   :  { %v182_v21 = vld [vmem:[%s385_s2] ss:$0 sm:$0xff]  ;;  %s171_s24 = sshll.u32 %s296_s23, 4  ;;  %s172_s24 = int_to_ptr.vmem [resolvable:$true] %s171_s24 }
  0x2a   :  { %203 = vmatpush3.bf16.msra.mxu0 %v202_v11  ;;  %v183_v24 = vld [vmem:[%s387_s4] ss:$0 sm:$0xff]  ;;  %s261_s1 = scalar_lea.vmem %s172_s24, 128  ;;  %p266_p3 = scmp.lt.s32.totalorder %s172_s24, %s172_s24 }
  0x2b   :  { %204 = vmatprep.subr.bf16.mxu0 %v293_v10  ;;  %p262_p2 = scmp.ne.s32.totalorder %s172_s24, %s261_s1  ;;  %p267_p4 = scmp.lt.s32.totalorder %s261_s1, %s261_s1 }
  0x2d   :  { %p268_p5 = por %p267_p4, %p266_p3 }
  0x2e   :  { %206 = vmatpush3.bf16.msra.mxu0 %v205_v14 }
  0x2f   :  { %p269_p6 = pnand %p268_p5, %p262_p2 }
  0xb5   :  { %v53_v2 = vpop.xlane.xlu0 %52 }
  0xb6   :  { %v55_v3 = vmul.f32 0.03125, %v53_v2 }
  0xb8   :  { %v56_v4 = vsub.f32 %v47_v0, %v55_v3 }
  0xba   :  { %v57_v5 = vmul.f32 %v56_v4, %v56_v4 }
  0xbc   :  { %v58_v6 = vsel %vm50_vm0, %v57_v5, 0.0 }
  0xbd   :  { %59 = vadd.xlane.f32.xlu0 %v58_v6 }
 0x14a   :  { %v60_v15 = vpop.xlane.xlu0 %59 }
 0x14b   :  { %v61_v16 = vmul.f32 0.03125, %v60_v15 }
 0x14d   :  { %v62_v17 = vadd.f32 1e-05, %v61_v16 }
 0x14f   :  { %215 = vrsqrt.f32 %v62_v17 }
 0x159   :  { %v216_v18 = vpop.eup %215 }
 0x15a   :  { %v64_v20 = vmul.f32 %v216_v18, %v56_v4 }
 0x15c   :  { %v71_v22 = vmul.f32 %v181_v19, %v64_v20 }
 0x15e   :  { %v78_v23 = vadd.f32 %v182_v21, %v71_v22 }
 0x160   :  { %199 = vmatmul.mubr.msk.f32.vlgmr.msra.gmra.mrb[0].mxu0 %vm50_vm0, %v78_v23 }
 0x233   :  { %v159_v25 = vpop.f32.mrb[0].mxu0 }
 0x234   :  { %v160_v26 = vadd.f32 %v183_v24, %v159_v25  ;;  %v200_v27 = vpop.f32.mrb[1].mxu0 }
 0x236   :  { %v163_v28 = vmul.f32 0.35355338, %v160_v26 }
 0x238   :  { %164 = vst.msk [vmem:[#allocation7] sm:$0xff] %vm50_vm0, %v163_v28 }
 0x239   :  { %272 = shalt.err (!%p269_p6)
}
 0x23a   :  { %s273_s4 = scalar_lea.hbm %s388_s5, 128 }
 0x23b   :  { %p274_p7 = scmp.ne.s32.totalorder %s388_s5, %s273_s4  ;;  %p277_p8 = scmp.lt.u32.totalorder %s273_s4, %s388_s5 }
 0x23d   :  { %p279_p9 = pnand %p277_p8, %p274_p7 }
 0x23f   :  { %282 = shalt.err (!%p279_p9)
}
 0x240   :  { %174 = dma.vmem_to_hbm [thread:$0]  %s172_s24, 128, %s388_s5, [#allocation4]  }
 0x241   :  { %287 = dma.done.wait [#allocation4], 128  }
 0x242   :  { %288 = vsyncadd [#allocation4], 4294967168 }
 0x243   :  { %178 = vsyncpa [#allocation3], 1 }
 0x244   :  { %179 = vsyncpa [#allocation6], 1 }
 0x245   :  { %180 = vsyncpa [#allocation4], 1 }

</bundles_post_ra>
